<compile_context>
chip_gen: v6e
topology: v6e:2x2x1
jax: 0.10.0
libtpu: 0.0.40
codegen_flags: <defaults>
</compile_context>

<pallas_src>
import functools

import jax
import jax.numpy as jnp
from jax import lax
from jax.experimental import pallas as pl
from jax.experimental.pallas import tpu as pltpu

_LANES = 128
_TILE_ROWS = 2048  # 2048 x 128 f32 = 1 MiB per input block


def _round_up(a: int, b: int) -> int:
    return (a + b - 1) // b * b


def _cdiv(a: int, b: int) -> int:
    return (a + b - 1) // b


def _bce_lane_dense_kernel(*refs,
                           fused_labels: bool, num_label_classes: int,
                           on_value: float, threshold,
                           has_weight: bool, has_pos_weight: bool,
                           needs_mask: bool, valid_row: int, valid_col: int,
                           num_tiles: int):
    """One lane-dense tile of stable BCE-with-logits; writes an (8,128) partial sum."""
    it = iter(refs)
    x_ref = next(it)
    t_ref = next(it)
    w_ref = next(it) if has_weight else None
    pwm1_ref = next(it) if has_pos_weight else None
    out_ref = next(it)

    x = x_ref[...].astype(jnp.float32)                 # (tile_rows, 128)

    # ---- target construction (fused for the class-label path) ----
    if fused_labels:
        lab = t_ref[...].astype(jnp.float32)           # label replicated per class lane
        if num_label_classes == 2:
            pos = lab * on_value                       # torch: t[:, 1] = label * on_value
            parity = lax.broadcasted_iota(jnp.int32, (1, _LANES), 1) % 2
            t = jnp.where(parity == 1, pos, 1.0 - pos)  # t[:, 0] = 1 - t[:, 1]
        else:                                          # single logit column
            t = lab * on_value                         # wrapper already binarized label
    else:
        t = t_ref[...].astype(jnp.float32)
    if threshold is not None:
        t = (t > threshold).astype(jnp.float32)

    # ---- numerically stable BCE-with-logits (PyTorch semantics) ----
    #   loss = w * [ (1 - t) * x + (1 + (pw - 1) * t) * softplus(-x) ]
    sp_neg = jnp.log1p(jnp.exp(-jnp.abs(x))) + jnp.maximum(-x, 0.0)
    if has_pos_weight:
        pwm1 = pwm1_ref[...].astype(jnp.float32)       # (1, 128): per-lane (pos_weight - 1)
        loss = (1.0 - t) * x + (1.0 + pwm1 * t) * sp_neg
    else:
        loss = (1.0 - t) * x + sp_neg
    if has_weight:
        loss = w_ref[...].astype(jnp.float32) * loss   # (1, 128) per-lane class weight

    tile_rows = loss.shape[0]

    def _partial_sum(v):
        # Reduce rows in 8-sublane groups: pure VPU adds, constant live set.
        return jnp.sum(v.reshape(tile_rows // 8, 8, _LANES), axis=0)

    def _store_masked():
        # (row, col) two-condition compare avoids int32 overflow of a linear index.
        row0 = pl.program_id(0) * tile_rows
        rows = row0 + lax.broadcasted_iota(jnp.int32, (tile_rows, _LANES), 0)
        cols = lax.broadcasted_iota(jnp.int32, (tile_rows, _LANES), 1)
        valid = (rows < valid_row) | ((rows == valid_row) & (cols < valid_col))
        out_ref[...] = _partial_sum(jnp.where(valid, loss, 0.0))

    if not needs_mask:
        out_ref[...] = _partial_sum(loss)
    elif num_tiles == 1:
        _store_masked()
    else:
        # Only the final tile can contain row padding / ragged-block garbage.
        is_last = pl.program_id(0) == num_tiles - 1

        @pl.when(is_last)
        def _():
            _store_masked()

        @pl.when(jnp.logical_not(is_last))
        def _():
            out_ref[...] = _partial_sum(loss)


def binary_cross_entropy_pos_smooth_only(
    x,
    target,
    *,
    smoothing: float = 0.1,
    target_threshold=None,
    weight=None,
    pos_weight=None,
    reduction: str = "mean",
):
    assert 0.0 <= smoothing < 1.0
    assert x.ndim == 2
    N, C = x.shape
    assert target.shape[0] == N

    on_value = 1.0 - smoothing
    fused_labels = tuple(target.shape) != tuple(x.shape)

    if reduction == "mean":
        scale = 1.0 / float(N * C)
    elif reduction == "sum":
        scale = 1.0
    else:
        # TODO(synk): reduction='none' (per-element loss output) not implemented here.
        raise NotImplementedError("only 'mean' and 'sum' reductions are implemented")

    # ---------- second input stream: raw labels (fused) or dense target ----------
    if fused_labels:
        assert 1 <= C <= 2
        lab = target.reshape(-1)
        if C == 1:
            # torch: where(target.bool(), on_value, 0) -> binarize up front, int8 stream
            lab = (lab != 0).astype(jnp.int8)
        else:
            # torch: target.float() * on_value — 0/1 class indices fit int8 exactly;
            # float-valued labels keep their dtype to preserve values.
            if jnp.issubdtype(lab.dtype, jnp.integer) or lab.dtype == jnp.bool_:
                lab = lab.astype(jnp.int8)
        t_in = jnp.broadcast_to(lab.reshape(N, 1), (N, C))
        Cp = C
    else:
        if C > _LANES:
            # TODO(synk): dense-target path with more than 128 classes is not lane-retiled.
            raise NotImplementedError("C > 128 is not supported by this kernel")
        Cp = 1 << (C - 1).bit_length()      # next power of two >= C (divides 128)
        t_in = target                       # native dtype; threshold fused in-kernel

    # Padded class columns must be killed by an explicit zero weight.
    has_weight = (weight is not None) or (Cp != C)
    has_pos_weight = pos_weight is not None

    # ---------- lane-dense re-tiling: (N, C) -> (M, 128) ----------
    # TODO(synk): this reshape is a physical relayout on TPU; if xprof shows it rivaling
    # the kernel, block over the native (N, C) layout instead and benchmark both.
    G = _LANES // Cp                        # samples packed per 128-lane row
    N_G = _round_up(N, 8 * G)               # keeps M sublane-aligned (multiple of 8)
    M = N_G // G

    pad_rows, pad_cols = N_G - N, Cp - C
    if pad_rows or pad_cols:
        x = jnp.pad(x, ((0, pad_rows), (0, pad_cols)))
        t_in = jnp.pad(t_in, ((0, pad_rows), (0, pad_cols)))
    x_flat = x.reshape(M, _LANES)           # native dtype, no wrapper upcast
    t_flat = t_in.reshape(M, _LANES)

    # ---------- tile / grid selection ----------
    if M > _TILE_ROWS:
        tile_rows = _TILE_ROWS              # 1 MiB f32 blocks, ragged last block allowed
    else:
        tile_rows = M                       # single block == full array (always legal)
    grid = _cdiv(M, tile_rows)

    valid_elems = N * Cp                    # valid prefix of the flattened layout
    needs_mask = (grid * tile_rows * _LANES) != valid_elems

    # ---------- optional per-class weight / pos_weight lane patterns ----------
    in_specs = [
        pl.BlockSpec((tile_rows, _LANES), lambda i: (i, 0)),   # logits
        pl.BlockSpec((tile_rows, _LANES), lambda i: (i, 0)),   # labels / dense target
    ]
    args = [x_flat, t_flat]
    if has_weight:
        w_vec = (jnp.ones((C,), jnp.float32) if weight is None
                 else jnp.asarray(weight, jnp.float32).reshape(C))
        if pad_cols:
            w_vec = jnp.concatenate([w_vec, jnp.zeros((pad_cols,), jnp.float32)])
        args.append(jnp.tile(w_vec, (G,)).reshape(1, _LANES))
        in_specs.append(pl.BlockSpec((1, _LANES), lambda i: (0, 0)))
    if has_pos_weight:
        pw_vec = jnp.asarray(pos_weight, jnp.float32).reshape(C)
        if pad_cols:
            pw_vec = jnp.concatenate([pw_vec, jnp.ones((pad_cols,), jnp.float32)])
        args.append(jnp.tile(pw_vec - 1.0, (G,)).reshape(1, _LANES))
        in_specs.append(pl.BlockSpec((1, _LANES), lambda i: (0, 0)))

    kernel = functools.partial(
        _bce_lane_dense_kernel,
        fused_labels=fused_labels,
        num_label_classes=(C if fused_labels else 0),
        on_value=on_value,
        threshold=(None if target_threshold is None else float(target_threshold)),
        has_weight=has_weight,
        has_pos_weight=has_pos_weight,
        needs_mask=needs_mask,
        valid_row=valid_elems // _LANES,
        valid_col=valid_elems % _LANES,
        num_tiles=grid,
    )

    bytes_accessed = int(x_flat.size * x_flat.dtype.itemsize
                         + t_flat.size * t_flat.dtype.itemsize
                         + grid * 8 * _LANES * 4)
    cost = pl.CostEstimate(flops=10 * M * _LANES,
                           transcendentals=2 * M * _LANES,
                           bytes_accessed=bytes_accessed)

    partials = pl.pallas_call(
        kernel,
        out_shape=jax.ShapeDtypeStruct((grid * 8, _LANES), jnp.float32),
        grid_spec=pltpu.PrefetchScalarGridSpec(
            num_scalar_prefetch=0,
            grid=(grid,),
            in_specs=in_specs,
            out_specs=pl.BlockSpec((8, _LANES), lambda i: (i, 0)),  # per-tile partial sums
        ),
        compiler_params=pltpu.CompilerParams(
            dimension_semantics=("parallel",),     # independent tiles -> megacore on v7x
            vmem_limit_bytes=32 * 1024 * 1024,
        ),
        cost_estimate=cost,
    )(*args)

    return jnp.sum(partials, dtype=jnp.float32) * scale


def _reference(x, target, *, smoothing, target_threshold, weight, pos_weight, reduction):
    """Plain-JAX transcription of the PyTorch module's forward (f32)."""
    x = x.astype(jnp.float32)
    N, C = x.shape
    if tuple(target.shape) != tuple(x.shape):
        on_value = 1.0 - smoothing
        if C > 1:
            t1 = target.astype(jnp.float32).reshape(-1, 1) * on_value
            t = jnp.concatenate([1.0 - t1, t1], axis=1)
        else:
            t = jnp.where(target.reshape(-1, 1) != 0, on_value, 0.0).astype(jnp.float32)
    else:
        t = target.astype(jnp.float32)
    if target_threshold is not None:
        t = (t > target_threshold).astype(jnp.float32)
    w = (jnp.ones((1, C), jnp.float32) if weight is None
         else jnp.asarray(weight, jnp.float32).reshape(1, C))
    pw = (jnp.ones((1, C), jnp.float32) if pos_weight is None
          else jnp.asarray(pos_weight, jnp.float32).reshape(1, C))
    sp_neg = jnp.log1p(jnp.exp(-jnp.abs(x))) + jnp.maximum(-x, 0.0)
    loss = w * ((1.0 - t) * x + (1.0 + (pw - 1.0) * t) * sp_neg)
    return jnp.mean(loss) if reduction == "mean" else jnp.sum(loss)


if __name__ == "__main__":
    key = jax.random.PRNGKey(0)
    kx, kt, kx1, kt1, kx2, kt2 = jax.random.split(key, 6)
    smoothing = 0.1

    # --- test 1: C=2 class-label path (fused int8 target), 'mean', weight + pos_weight ---
    N, C = 128, 2
    x = jax.random.normal(kx, (N, C), dtype=jnp.float32)
    labels = jax.random.bernoulli(kt, 0.5, (N,)).astype(jnp.int32)
    weight = jnp.array([1.0, 1.5], dtype=jnp.float32)
    pos_weight = jnp.array([1.0, 2.0], dtype=jnp.float32)
    got = binary_cross_entropy_pos_smooth_only(
        x, labels, smoothing=smoothing, weight=weight, pos_weight=pos_weight,
        reduction="mean")
    got = jax.block_until_ready(got)
    want = _reference(x, labels, smoothing=smoothing, target_threshold=None,
                      weight=weight, pos_weight=pos_weight, reduction="mean")
    assert jnp.allclose(got, want, rtol=1e-5, atol=1e-5), (got, want)

    # --- test 2: C=1 class-label path, 'sum', unweighted specialization ---
    N1, C1 = 96, 1
    x1 = jax.random.normal(kx1, (N1, C1), dtype=jnp.float32)
    labels1 = jax.random.bernoulli(kt1, 0.5, (N1,)).astype(jnp.int32)
    got1 = binary_cross_entropy_pos_smooth_only(
        x1, labels1, smoothing=smoothing, reduction="sum")
    got1 = jax.block_until_ready(got1)
    want1 = _reference(x1, labels1, smoothing=smoothing, target_threshold=None,
                       weight=None, pos_weight=None, reduction="sum")
    assert jnp.allclose(got1, want1, rtol=1e-5, atol=1e-4), (got1, want1)

    # --- test 3: dense-target path (C=3 -> padded to 4 lanes), fused threshold, 'mean' ---
    N2, C2 = 64, 3
    x2 = jax.random.normal(kx2, (N2, C2), dtype=jnp.float32)
    t2 = jax.random.uniform(kt2, (N2, C2), dtype=jnp.float32)
    pw2 = jnp.array([1.0, 0.5, 2.0], dtype=jnp.float32)
    got2 = binary_cross_entropy_pos_smooth_only(
        x2, t2, smoothing=smoothing, target_threshold=0.5, pos_weight=pw2,
        reduction="mean")
    got2 = jax.block_until_ready(got2)
    want2 = _reference(x2, t2, smoothing=smoothing, target_threshold=0.5,
                       weight=None, pos_weight=pw2, reduction="mean")
    assert jnp.allclose(got2, want2, rtol=1e-5, atol=1e-5), (got2, want2)

    print("KERNEL_OK")
</pallas_src>

<mosaic_0001>
module attributes {stable_mosaic.version = 11 : i64} {
  func.func @_bce_lane_dense_kernel(%arg0: i32, %arg1: memref<8x128xf32, #tpu.memory_space<vmem>>, %arg2: memref<8x128xi8, #tpu.memory_space<vmem>>, %arg3: memref<1x128xf32, #tpu.memory_space<vmem>>, %arg4: memref<1x128xf32, #tpu.memory_space<vmem>>, %arg5: memref<8x128xf32, #tpu.memory_space<vmem>>) attributes {dimension_semantics = [#tpu.dimension_semantics<parallel>], iteration_bounds = array<i64: 1>, scalar_prefetch = 0 : i64, scratch_operands = 0 : i64, tpu.core_type = #tpu.core_type<tc>, window_params = [{transform_indices = @transform_0, window_bounds = array<i64: 8, 128>}, {transform_indices = @transform_1, window_bounds = array<i64: 8, 128>}, {pipeline_mode = #tpu.pipeline_mode<synchronous>, transform_indices = @transform_2, window_bounds = array<i64: 1, 128>}, {pipeline_mode = #tpu.pipeline_mode<synchronous>, transform_indices = @transform_3, window_bounds = array<i64: 1, 128>}, {transform_indices = @transform_4, window_bounds = array<i64: 8, 128>}]} {
    %c0 = arith.constant 0 : index
    %c0_0 = arith.constant 0 : index
    %0 = vector.load %arg1[%c0, %c0_0] : memref<8x128xf32, #tpu.memory_space<vmem>>, vector<8x128xf32>
    %c0_1 = arith.constant 0 : index
    %c0_2 = arith.constant 0 : index
    %1 = vector.load %arg2[%c0_1, %c0_2] : memref<8x128xi8, #tpu.memory_space<vmem>>, vector<8x128xi8>
    %2 = arith.sitofp %1 : vector<8x128xi8> to vector<8x128xf32>
    %cst = arith.constant 0.899999976 : f32
    %3 = vector.broadcast %cst : f32 to vector<8x128xf32>
    %4 = arith.mulf %2, %3 : vector<8x128xf32>
    %5 = tpu.iota {dimensions = array<i32: 1>} : vector<1x128xi32>
    %c2_i32 = arith.constant 2 : i32
    %c0_i32 = arith.constant 0 : i32
    %6 = arith.cmpi eq, %c2_i32, %c0_i32 : i32
    %c1_i32 = arith.constant 1 : i32
    %7 = arith.select %6, %c1_i32, %c2_i32 : i32
    %8 = vector.broadcast %7 : i32 to vector<1x128xi32>
    %9 = arith.remsi %5, %8 : vector<1x128xi32>
    %c0_i32_3 = arith.constant 0 : i32
    %10 = vector.broadcast %c0_i32_3 : i32 to vector<1x128xi32>
    %11 = arith.cmpi ne, %9, %10 : vector<1x128xi32>
    %c0_i32_4 = arith.constant 0 : i32
    %12 = vector.broadcast %c0_i32_4 : i32 to vector<1x128xi32>
    %13 = arith.cmpi slt, %9, %12 : vector<1x128xi32>
    %c0_i32_5 = arith.constant 0 : i32
    %14 = arith.cmpi slt, %7, %c0_i32_5 : i32
    %15 = vector.broadcast %14 : i1 to vector<1x128xi1>
    %16 = vector.broadcast %15 : vector<1x128xi1> to vector<1x128xi1>
    %17 = arith.xori %13, %16 : vector<1x128xi1>
    %18 = arith.andi %17, %11 : vector<1x128xi1>
    %19 = vector.broadcast %7 : i32 to vector<1x128xi32>
    %20 = arith.addi %9, %19 : vector<1x128xi32>
    %21 = arith.select %18, %20, %9 : vector<1x128xi1>, vector<1x128xi32>
    %c1_i32_6 = arith.constant 1 : i32
    %22 = vector.broadcast %c1_i32_6 : i32 to vector<1x128xi32>
    %23 = arith.cmpi eq, %21, %22 : vector<1x128xi32>
    %cst_7 = arith.constant 1.000000e+00 : f32
    %24 = vector.broadcast %cst_7 : f32 to vector<8x128xf32>
    %25 = arith.subf %24, %4 : vector<8x128xf32>
    %26 = vector.shape_cast %23 : vector<1x128xi1> to vector<1x128xi1>
    %27 = vector.broadcast %26 : vector<1x128xi1> to vector<8x128xi1>
    %28 = arith.select %27, %4, %25 : vector<8x128xi1>, vector<8x128xf32>
    %29 = math.absf %0 : vector<8x128xf32>
    %cst_8 = arith.constant 0.000000e+00 : f32
    %30 = vector.broadcast %cst_8 : f32 to vector<8x128xf32>
    %31 = arith.subf %30, %29 : vector<8x128xf32>
    %32 = math.exp %31 : vector<8x128xf32>
    %33 = math.log1p %32 : vector<8x128xf32>
    %cst_9 = arith.constant 0.000000e+00 : f32
    %34 = vector.broadcast %cst_9 : f32 to vector<8x128xf32>
    %35 = arith.subf %34, %0 : vector<8x128xf32>
    %cst_10 = arith.constant 0.000000e+00 : f32
    %36 = vector.broadcast %cst_10 : f32 to vector<8x128xf32>
    %37 = arith.maximumf %35, %36 : vector<8x128xf32>
    %38 = arith.addf %33, %37 : vector<8x128xf32>
    %c0_11 = arith.constant 0 : index
    %c0_12 = arith.constant 0 : index
    %39 = vector.load %arg4[%c0_11, %c0_12] : memref<1x128xf32, #tpu.memory_space<vmem>>, vector<1x128xf32>
    %cst_13 = arith.constant 1.000000e+00 : f32
    %40 = vector.broadcast %cst_13 : f32 to vector<8x128xf32>
    %41 = arith.subf %40, %28 : vector<8x128xf32>
    %42 = arith.mulf %41, %0 : vector<8x128xf32>
    %43 = vector.broadcast %39 : vector<1x128xf32> to vector<8x128xf32>
    %44 = arith.mulf %43, %28 : vector<8x128xf32>
    %cst_14 = arith.constant 1.000000e+00 : f32
    %45 = vector.broadcast %cst_14 : f32 to vector<8x128xf32>
    %46 = arith.addf %45, %44 : vector<8x128xf32>
    %47 = arith.mulf %46, %38 : vector<8x128xf32>
    %48 = arith.addf %42, %47 : vector<8x128xf32>
    %c0_15 = arith.constant 0 : index
    %c0_16 = arith.constant 0 : index
    %49 = vector.load %arg3[%c0_15, %c0_16] : memref<1x128xf32, #tpu.memory_space<vmem>>, vector<1x128xf32>
    %50 = vector.broadcast %49 : vector<1x128xf32> to vector<8x128xf32>
    %51 = arith.mulf %50, %48 : vector<8x128xf32>
    %c8_i32 = arith.constant 8 : i32
    %52 = arith.muli %arg0, %c8_i32 : i32
    %53 = tpu.iota {dimensions = array<i32: 0>} : vector<8x128xi32>
    %54 = vector.broadcast %52 : i32 to vector<8x128xi32>
    %55 = arith.addi %54, %53 : vector<8x128xi32>
    %56 = tpu.iota {dimensions = array<i32: 1>} : vector<8x128xi32>
    %c2_i32_17 = arith.constant 2 : i32
    %57 = vector.broadcast %c2_i32_17 : i32 to vector<8x128xi32>
    %58 = arith.cmpi slt, %55, %57 : vector<8x128xi32>
    %c2_i32_18 = arith.constant 2 : i32
    %59 = vector.broadcast %c2_i32_18 : i32 to vector<8x128xi32>
    %60 = arith.cmpi eq, %55, %59 : vector<8x128xi32>
    %c0_i32_19 = arith.constant 0 : i32
    %61 = vector.broadcast %c0_i32_19 : i32 to vector<8x128xi32>
    %62 = arith.cmpi slt, %56, %61 : vector<8x128xi32>
    %63 = arith.andi %60, %62 : vector<8x128xi1>
    %64 = arith.ori %58, %63 : vector<8x128xi1>
    %cst_20 = arith.constant 0.000000e+00 : f32
    %65 = vector.broadcast %cst_20 : f32 to vector<8x128xf32>
    %66 = arith.select %64, %51, %65 : vector<8x128xi1>, vector<8x128xf32>
    %67 = vector.shape_cast %66 : vector<8x128xf32> to vector<1x8x128xf32>
    %cst_21 = arith.constant dense<0.000000e+00> : vector<8x128xf32>
    %68 = vector.multi_reduction <add>, %67, %cst_21 [0] : vector<1x8x128xf32> to vector<8x128xf32>
    %c0_22 = arith.constant 0 : index
    %c0_23 = arith.constant 0 : index
    %69 = vector.load %arg5[%c0_22, %c0_23] : memref<8x128xf32, #tpu.memory_space<vmem>>, vector<8x128xf32>
    tpu.vector_store %arg5[%c0_22, %c0_23], %68 {strides = array<i32>} : memref<8x128xf32, #tpu.memory_space<vmem>>, vector<8x128xf32>,
    return
  }
  func.func @transform_0(%arg0: i32) -> (i32, i32) {
    %c0_i32 = arith.constant 0 : i32
    %c0_i32_0 = arith.constant 0 : i32
    return %arg0, %c0_i32 : i32, i32
  }
  func.func @transform_1(%arg0: i32) -> (i32, i32) {
    %c0_i32 = arith.constant 0 : i32
    %c0_i32_0 = arith.constant 0 : i32
    return %arg0, %c0_i32 : i32, i32
  }
  func.func @transform_2(%arg0: i32) -> (i32, i32) {
    %c0_i32 = arith.constant 0 : i32
    %c0_i32_0 = arith.constant 0 : i32
    %c0_i32_1 = arith.constant 0 : i32
    return %c0_i32, %c0_i32_0 : i32, i32
  }
  func.func @transform_3(%arg0: i32) -> (i32, i32) {
    %c0_i32 = arith.constant 0 : i32
    %c0_i32_0 = arith.constant 0 : i32
    %c0_i32_1 = arith.constant 0 : i32
    return %c0_i32, %c0_i32_0 : i32, i32
  }
  func.func @transform_4(%arg0: i32) -> (i32, i32) {
    %c0_i32 = arith.constant 0 : i32
    %c0_i32_0 = arith.constant 0 : i32
    return %arg0, %c0_i32 : i32, i32
  }
}

</mosaic_0001>

<bundles_post_ra>
// kernel: tpu_custom_call.1
= control target key start
LH: loop header
LB: loop body
LE: loop exit
PB: predicated region body
PF: predicated region fallthrough
CT: control target
= control target key end

     0   :  { %9 = vsyncpa [#allocation3], 0  ;;  %s250_s0 = inlined_call_operand.hbm [shape: f32[8,128], index: 0, kind: input, shape index: {}]   ;;  %s251_s1 = inlined_call_operand.hbm [shape: s8[8,128], index: 1, kind: input, shape index: {}]   ;;  %s252_s2 = inlined_call_operand.vmem [shape: f32[1,128], index: 2, kind: input, shape index: {}]   ;;  %s253_s3 = inlined_call_operand.vmem [shape: f32[1,128], index: 3, kind: input, shape index: {}]   ;;  %s254_s4 = inlined_call_operand.hbm [shape: f32[8,128], index: 4, kind: output, shape index: {}]  }
   0x1   :  { %10 = vsyncpa [#allocation6], 0 }
   0x2   :  { %11 = vsyncpa [#allocation4], 0  ;;  %s207_s15 = smov [#allocation2]   ;;  %s208_s17 = smov [#allocation5]  }
   0x3   :  { %s18_s16 = sshll.u32 %s207_s15, 4  ;;  %s28_s18 = sshll.u32 %s208_s17, 4  ;;  %s19_s16 = int_to_ptr.vmem [resolvable:$true] %s18_s16  ;;  %s29_s18 = int_to_ptr.vmem [resolvable:$true] %s28_s18 }
   0x4   :  { %s149_s19 = scalar_lea.vmem %s19_s16, 128  ;;  %p154_p1 = scmp.lt.s32.totalorder %s19_s16, %s19_s16 }
   0x5   :  { %p150_p0 = scmp.ne.s32.totalorder %s19_s16, %s149_s19  ;;  %p155_p2 = scmp.lt.s32.totalorder %s149_s19, %s149_s19 }
   0x7   :  { %p156_p3 = por %p155_p2, %p154_p1 }
   0x9   :  { %p157_p4 = pnand %p156_p3, %p150_p0 }
   0xb   :  { %160 = shalt.err (!%p157_p4)
}
   0xc   :  { %21 = dma.hbm_to_vmem [thread:$0]  %s250_s0, 128, %s19_s16, [#allocation3]  }
   0xd   :  { %s169_s22 = scalar_lea.vmem %s29_s18, 32  ;;  %p174_p6 = scmp.lt.s32.totalorder %s29_s18, %s29_s18 }
   0xe   :  { %p170_p5 = scmp.ne.s32.totalorder %s29_s18, %s169_s22  ;;  %p175_p7 = scmp.lt.s32.totalorder %s169_s22, %s169_s22 }
  0x10   :  { %p176_p8 = por %p175_p7, %p174_p6 }
  0x12   :  { %p177_p9 = pnand %p176_p8, %p170_p5 }
  0x14   :  { %180 = shalt.err (!%p177_p9)
}
  0x15   :  { %31 = dma.hbm_to_vmem [thread:$0]  %s251_s1, 32, %s29_s18, [#allocation6]  }
  0x16   :  { %201 = dma.done.wait [#allocation3], 128  }
  0x17   :  { %202 = vsyncadd [#allocation3], 4294967168 }
  0x18   :  { %203 = dma.done.wait [#allocation6], 32  }
  0x19   :  { %204 = vsyncadd [#allocation6], 4294967264  ;;  %v42_v0 = vld [vmem:[#allocation2] sm:$0xff]  ;;  %v43_v4 = vld [vmem:[#allocation5] sm:$0x3]  ;;  %v47_v6 = vlaneseq }
  0x1a   :  { %v66_v1 = vand.u32 2147483647, %v42_v0  ;;  %v44_v5 = vunpack.c.0.s8 %v43_v4  ;;  %v132_v17 = vld [vmem:[%s253_s3] ss:$0 sm:$0xff]  ;;  %v79_v19 = vsub.f32 0.0, %v42_v0  ;;  %s209_s3 = smov [#allocation7]  }
  0x1b   :  { %v48_v9 = vand.u32 127, %v47_v6  ;;  %v105_v30 = vshrl.u32 %v47_v6, 7  ;;  %v133_v32 = vld [vmem:[%s252_s2] ss:$0 sm:$0xff]  ;;  %s122_s27 = sshll.u32 %s209_s3, 4  ;;  %s123_s27 = int_to_ptr.vmem [resolvable:$true] %s122_s27 }
  0x1c   :  { %v67_v2 = vsub.f32 0.0, %v66_v1  ;;  %v45_v7 = vcvt.s32.f32 %v44_v5  ;;  %v80_v23 = vmax.f32 %v79_v19, 0.0  ;;  %s181_s28 = scalar_lea.vmem %s123_s27, 128  ;;  %p186_p11 = scmp.lt.s32.totalorder %s123_s27, %s123_s27 }
  0x1d   :  { %v53_v12 = vand.u32 1, %v48_v9  ;;  %vm108_vm2 = vcmp.lt.s32.totalorder %v105_v30, 2  ;;  %p182_p10 = scmp.ne.s32.totalorder %s123_s27, %s181_s28  ;;  %p187_p12 = scmp.lt.s32.totalorder %s181_s28, %s181_s28 }
  0x1e   :  { %v68_v3 = vmul.f32 1.442695, %v67_v2  ;;  %v46_v11 = vmul.f32 0.9, %v45_v7 }
  0x1f   :  { %vm61_vm0 = vcmp.eq.s32.totalorder %v53_v12, 1  ;;  %p188_p13 = por %p187_p12, %p186_p11 }
  0x20   :  { %137 = vpow2.f32 %v68_v3  ;;  %v62_v13 = vsub.f32 1.0, %v46_v11 }
  0x21   :  { %p189_p0 = pnand %p188_p13, %p182_p10 }
  0x22   :  { %v65_v15 = vsel %vm61_vm0, %v46_v11, %v62_v13 }
  0x23   :  { %v91_v20 = vmul.f32 %v132_v17, %v65_v15  ;;  %v83_v24 = vsub.f32 1.0, %v65_v15 }
  0x25   :  { %v92_v26 = vadd.f32 1.0, %v91_v20  ;;  %v84_v29 = vmul.f32 %v83_v24, %v42_v0 }
  0x2d   :  { %v138_v8 = vpop.eup %137 }
  0x2e   :  { %v70_v10 = vadd.f32 1.0, %v138_v8  ;;  %v73_v14 = vmul.f32 -0.5, %v138_v8  ;;  %v76_v18 = vand.u32 2147483647, %v138_v8 }
  0x30   :  { %139 = vlog2.f32 %v70_v10  ;;  %v74_v16 = vadd.f32 1.0, %v73_v14  ;;  %vm77_vm1 = vcmp.lt.f32.partialorder %v76_v18, 0.0004427343 }
  0x32   :  { %v75_v21 = vmul.f32 %v138_v8, %v74_v16 }
  0x3d   :  { %v140_v22 = vpop.eup %139 }
  0x3e   :  { %v72_v25 = vmul.f32 0.6931472, %v140_v22 }
  0x40   :  { %v78_v27 = vsel %vm77_vm1, %v75_v21, %v72_v25 }
  0x41   :  { %v81_v28 = vadd.f32 %v80_v23, %v78_v27 }
  0x43   :  { %v93_v31 = vmul.f32 %v92_v26, %v81_v28 }
  0x45   :  { %v94_v33 = vadd.f32 %v93_v31, %v84_v29 }
  0x47   :  { %v102_v34 = vmul.f32 %v133_v32, %v94_v33 }
  0x49   :  { %v113_v35 = vsel %vm108_vm2, %v102_v34, 0.0 }
  0x4a   :  { %115 = vst [vmem:[#allocation7] sm:$0xff] %v113_v35 }
  0x4b   :  { %192 = shalt.err (!%p189_p0)
}
  0x4c   :  { %125 = dma.vmem_to_hbm [thread:$0]  %s123_s27, 128, %s254_s4, [#allocation4]  }
  0x4d   :  { %205 = dma.done.wait [#allocation4], 128  }
  0x4e   :  { %206 = vsyncadd [#allocation4], 4294967168 }
  0x4f   :  { %129 = vsyncpa [#allocation3], 1 }
  0x50   :  { %130 = vsyncpa [#allocation6], 1 }
  0x51   :  { %131 = vsyncpa [#allocation4], 1 }

</bundles_post_ra>
